<compile_context>
chip_gen: v7x
topology: tpu7x:2x2x1
jax: 0.10.0
libtpu: 0.0.40
codegen_flags: <defaults>
</compile_context>

<pallas_src>
import functools

import jax
import jax.numpy as jnp
import numpy as np
from jax.experimental import pallas as pl
from jax.experimental.pallas import tpu as pltpu


# Large finite negative for masked keys: identical softmax result to -inf whenever a
# row has at least one valid key (exp underflows to exactly 0), but never produces NaN.
_MASK_VALUE = -1e30


# --------------------------- stage 1: Q / fused-KV projection ---------------------------
def qkv_proj_kernel(scale, x_ref, wq_ref, bq_ref, wkv_ref, bkv_ref,
                    q_ref, k_ref, v_ref):
    """Project one (batch, row-tile) of x once; K|V weights fused, scale folded into Q."""
    x = x_ref[0]                                                   # (TR, H) bf16
    H = x.shape[1]
    q = jnp.dot(x, wq_ref[...], preferred_element_type=jnp.float32) + bq_ref[...]
    kv = jnp.dot(x, wkv_ref[...], preferred_element_type=jnp.float32) + bkv_ref[...]
    q_ref[0] = (q * scale).astype(jnp.bfloat16)                    # 1/sqrt(hd) folded in
    k_ref[0] = kv[:, :H].astype(jnp.bfloat16)
    v_ref[0] = kv[:, H:].astype(jnp.bfloat16)


# ----------------- stage 2: flash-style attention + fused output projection -----------------
def attn_kernel(num_heads, q_ref, k_ref, v_ref, bias_ref, wo_ref, bo_ref,
                o_ref, m_sc, l_sc, acc_sc):
    """One (batch, query-tile, key-tile) program with online softmax."""
    kt = pl.program_id(2)

    @pl.when(kt == 0)
    def _init():
        m_sc[...] = jnp.full(m_sc.shape, -jnp.inf, dtype=m_sc.dtype)
        l_sc[...] = jnp.zeros(l_sc.shape, dtype=l_sc.dtype)
        acc_sc[...] = jnp.zeros(acc_sc.shape, dtype=acc_sc.dtype)

    q = q_ref[0]                                                   # (TQ, H) bf16, scaled
    k = k_ref[0]                                                   # (TK, H) bf16
    v = v_ref[0]                                                   # (TK, H) bf16
    TQ, H = q.shape
    hd = H // num_heads

    # single relayout to head-major (no per-head slice + stack)
    q3 = jnp.swapaxes(q.reshape(TQ, num_heads, hd), 0, 1)          # (nh, TQ, hd)
    k3 = jnp.swapaxes(k.reshape(-1, num_heads, hd), 0, 1)          # (nh, TK, hd)
    v3 = jnp.swapaxes(v.reshape(-1, num_heads, hd), 0, 1)          # (nh, TK, hd)

    s = jnp.einsum('hqd,hkd->hqk', q3, k3,
                   preferred_element_type=jnp.float32)             # (nh, TQ, TK)
    s = s + bias_ref[...][None]                                    # additive key bias

    m_prev = m_sc[...]
    m_new = jnp.maximum(m_prev, jnp.max(s, axis=-1, keepdims=True))
    alpha = jnp.exp(m_prev - m_new)
    p = jnp.exp(s - m_new)
    l_sc[...] = alpha * l_sc[...] + jnp.sum(p, axis=-1, keepdims=True)
    acc_sc[...] = alpha * acc_sc[...] + jnp.einsum(
        'hqk,hkd->hqd', p.astype(jnp.bfloat16), v3,
        preferred_element_type=jnp.float32)                        # (nh, TQ, hd)
    m_sc[...] = m_new
    # attention-prob dropout: identity (inference semantics)

    @pl.when(kt == pl.num_programs(2) - 1)
    def _finalize():
        ctx = acc_sc[...] * pl.reciprocal(l_sc[...], approx=True)  # (nh, TQ, hd)
        ctx2 = jnp.swapaxes(ctx, 0, 1).reshape(TQ, H)              # (TQ, H) head concat
        out = jnp.dot(ctx2.astype(jnp.bfloat16), wo_ref[...],      # ONE H-deep matmul
                      preferred_element_type=jnp.float32) + bo_ref[...]
        o_ref[0] = out.astype(o_ref.dtype)


# ----------------------------------- wrapper helpers -----------------------------------
def _round_up(x, m):
    return ((x + m - 1) // m) * m


def _vmem_budget_bytes():
    """Per-generation VMEM limit: physical capacity minus headroom for compiler scratch."""
    try:
        cap = int(pltpu.get_tpu_info().vmem_capacity_bytes)
    except Exception:
        cap = 64 * 2**20                     # conservative fallback (v7x per-TensorCore)
    return max(16 * 2**20, cap - 8 * 2**20)


def _pick_tile(S, H, num_heads, budget, batch):
    """VMEM-aware query/key tile; pads S instead of falling back to TQ=S."""
    hd = H // num_heads

    def est(t):
        return (2 * 2 * 3 * t * H                   # q,k,v bf16 blocks (double-buffered)
                + 2 * 4 * t                         # bias block
                + 2 * 4 * t * H                     # f32 output block
                + 4 * num_heads * t * (hd + 2)      # m / l / acc scratch
                + 2 * 4 * num_heads * t * t         # s and p f32 temporaries
                + 2 * (2 * H * H + 4 * H))          # resident Wo^T + bo

    cap = _round_up(min(S, 1024), 8)
    tile = 8
    for c in (1024, 512, 256, 128, 64, 32, 16, 8):
        if c <= cap and est(c) <= 0.7 * budget:
            tile = c
            break
    # 2-TensorCore chips (v7x): make sure there are >= 2 parallel grid steps
    while batch * pl.cdiv(S, tile) < 2 and tile > 8:
        tile //= 2
    return tile


def multihead_attention(x, mask, params, num_heads):
    """Self-attention (query = key = value = x); mask is (B, S) with 1.0 = masked key."""
    wq, bq, wkv, bkv, woT, bo = params
    B, S, H = x.shape
    assert H % num_heads == 0
    hd = H // num_heads

    budget = _vmem_budget_bytes()
    tile = _pick_tile(S, H, num_heads, budget, B)
    S_pad = _round_up(S, tile)

    xb = x.astype(jnp.bfloat16)                      # bf16 activations for all DMA/MXU
    if S_pad != S:
        xb = jnp.pad(xb, ((0, 0), (0, S_pad - S), (0, 0)))
        mask = jnp.pad(mask, ((0, 0), (0, S_pad - S)), constant_values=1.0)
    bias = jnp.where(mask > 0.5, jnp.float32(_MASK_VALUE), jnp.float32(0.0))

    # --- stage 1: projections, computed exactly once per row (hoisted out of attention) ---
    TR = tile

    def _const2(p):
        return pl.BlockSpec(p.shape, lambda b, r, nd=p.ndim: (0,) * nd)

    q, k, v = pl.pallas_call(
        functools.partial(qkv_proj_kernel, 1.0 / float(np.sqrt(hd))),
        out_shape=tuple(jax.ShapeDtypeStruct((B, S_pad, H), jnp.bfloat16) for _ in range(3)),
        grid_spec=pltpu.PrefetchScalarGridSpec(
            num_scalar_prefetch=0,
            grid=(B, S_pad // TR),
            in_specs=[pl.BlockSpec((1, TR, H), lambda b, r: (b, r, 0)),
                      _const2(wq), _const2(bq), _const2(wkv), _const2(bkv)],
            out_specs=tuple(pl.BlockSpec((1, TR, H), lambda b, r: (b, r, 0))
                            for _ in range(3)),
        ),
        compiler_params=pltpu.CompilerParams(
            dimension_semantics=("parallel", "parallel"),
            vmem_limit_bytes=budget),
    )(xb, wq, bq, wkv, bkv)

    # --- stage 2: online-softmax attention over key tiles + fused output projection ---
    TQ = TK = tile

    def _const3(p):
        return pl.BlockSpec(p.shape, lambda b, qt, kt, nd=p.ndim: (0,) * nd)

    out = pl.pallas_call(
        functools.partial(attn_kernel, num_heads),
        out_shape=jax.ShapeDtypeStruct((B, S_pad, H), jnp.float32),
        grid_spec=pltpu.PrefetchScalarGridSpec(
            num_scalar_prefetch=0,
            grid=(B, S_pad // TQ, S_pad // TK),
            in_specs=[pl.BlockSpec((1, TQ, H), lambda b, qt, kt: (b, qt, 0)),
                      pl.BlockSpec((1, TK, H), lambda b, qt, kt: (b, kt, 0)),
                      pl.BlockSpec((1, TK, H), lambda b, qt, kt: (b, kt, 0)),
                      pl.BlockSpec((1, TK), lambda b, qt, kt: (b, kt)),
                      _const3(woT), _const3(bo)],
            out_specs=pl.BlockSpec((1, TQ, H), lambda b, qt, kt: (b, qt, 0)),
            scratch_shapes=[pltpu.VMEM((num_heads, TQ, 1), jnp.float32),   # running max
                            pltpu.VMEM((num_heads, TQ, 1), jnp.float32),   # running denom
                            pltpu.VMEM((num_heads, TQ, hd), jnp.float32)], # running ctx
        ),
        compiler_params=pltpu.CompilerParams(
            dimension_semantics=("parallel", "parallel", "arbitrary"),
            vmem_limit_bytes=budget),
    )(q, k, v, bias, woT, bo)

    return out[:, :S, :] if S_pad != S else out


# ----------------- parameter init (deterministic, PyTorch nn.Linear-like) -----------------
def init_mha_params(key, hidden, num_heads):
    ks = jax.random.split(key, 4)

    def linear(k, fan_in, fan_out):
        bound = 1.0 / float(np.sqrt(fan_in))
        w = jax.random.uniform(k, (fan_out, fan_in), jnp.float32, -bound, bound)
        b = jax.random.uniform(jax.random.fold_in(k, 1), (fan_out,), jnp.float32, -bound, bound)
        return w, b

    wq, bq = linear(ks[0], hidden, hidden)
    wk, bk = linear(ks[1], hidden, hidden)
    wv, bv = linear(ks[2], hidden, hidden)
    wo, bo = linear(ks[3], hidden, hidden)

    kernel_params = [
        wq.T.astype(jnp.bfloat16),                                   # (H, H)  bf16
        bq.reshape(1, hidden),                                       # (1, H)  f32
        jnp.concatenate([wk.T, wv.T], axis=1).astype(jnp.bfloat16),  # (H, 2H) fused K|V
        jnp.concatenate([bk, bv]).reshape(1, 2 * hidden),            # (1, 2H) f32
        wo.T.astype(jnp.bfloat16),                                   # (H, H)  bf16 (Wo^T)
        bo.reshape(1, hidden),                                       # (1, H)  f32
    ]
    torch_params = (wq, bq, wk, bk, wv, bv, wo, bo)
    return kernel_params, torch_params


# ----------------- pure-JAX f32 reference (mirrors the PyTorch forward) -----------------
def ref_mha(x, mask, torch_params, num_heads):
    wq, bq, wk, bk, wv, bv, wo, bo = torch_params
    B, S, H = x.shape
    hd = H // num_heads

    def split(y):
        return y.reshape(B, S, num_heads, hd).transpose(0, 2, 1, 3)

    q = split(x @ wq.T + bq)
    k = split(x @ wk.T + bk)
    v = split(x @ wv.T + bv)
    s = jnp.einsum('bhqd,bhkd->bhqk', q, k) / np.sqrt(hd)
    s = jnp.where(mask[:, None, None, :] > 0.5, -jnp.inf, s)
    p = jax.nn.softmax(s, axis=-1)
    o = jnp.einsum('bhqk,bhkd->bhqd', p, v).transpose(0, 2, 1, 3).reshape(B, S, H)
    return o @ wo.T + bo


if __name__ == "__main__":
    num_heads, hidden_size = 4, 32
    B, S = 2, 8

    root = jax.random.PRNGKey(0)
    kx, kp = jax.random.split(root)
    x = jax.random.normal(kx, (B, S, hidden_size), jnp.float32)

    # key-padding mask: 1.0 = masked key; at least one valid key per row
    lengths = np.array([S, 5])
    mask = jnp.asarray((np.arange(S)[None, :] >= lengths[:, None]).astype(np.float32))

    kernel_params, torch_params = init_mha_params(kp, hidden_size, num_heads)

    out = jax.block_until_ready(multihead_attention(x, mask, kernel_params, num_heads))
    ref = jax.block_until_ready(ref_mha(x, mask, torch_params, num_heads))

    # bf16 MXU operands vs f32 reference -> loose-ish tolerance
    np.testing.assert_allclose(np.asarray(out), np.asarray(ref), rtol=5e-2, atol=5e-2)
    print("KERNEL_OK")
</pallas_src>

<mosaic_0001>
module attributes {stable_mosaic.version = 11 : i64} {
  func.func @qkv_proj_kernel(%arg0: i32, %arg1: i32, %arg2: memref<1x8x32xbf16, #tpu.memory_space<vmem>>, %arg3: memref<32x32xbf16, #tpu.memory_space<vmem>>, %arg4: memref<1x32xf32, #tpu.memory_space<vmem>>, %arg5: memref<32x64xbf16, #tpu.memory_space<vmem>>, %arg6: memref<1x64xf32, #tpu.memory_space<vmem>>, %arg7: memref<1x8x32xbf16, #tpu.memory_space<vmem>>, %arg8: memref<1x8x32xbf16, #tpu.memory_space<vmem>>, %arg9: memref<1x8x32xbf16, #tpu.memory_space<vmem>>) attributes {dimension_semantics = [#tpu.dimension_semantics<parallel>, #tpu.dimension_semantics<parallel>], iteration_bounds = array<i64: 2, 1>, scalar_prefetch = 0 : i64, scratch_operands = 0 : i64, tpu.core_type = #tpu.core_type<tc>, window_params = [{transform_indices = @transform_0, window_bounds = array<i64: 1, 8, 32>}, {pipeline_mode = #tpu.pipeline_mode<synchronous>, transform_indices = @transform_1, window_bounds = array<i64: 32, 32>}, {pipeline_mode = #tpu.pipeline_mode<synchronous>, transform_indices = @transform_2, window_bounds = array<i64: 1, 32>}, {pipeline_mode = #tpu.pipeline_mode<synchronous>, transform_indices = @transform_3, window_bounds = array<i64: 32, 64>}, {pipeline_mode = #tpu.pipeline_mode<synchronous>, transform_indices = @transform_4, window_bounds = array<i64: 1, 64>}, {transform_indices = @transform_5, window_bounds = array<i64: 1, 8, 32>}, {transform_indices = @transform_6, window_bounds = array<i64: 1, 8, 32>}, {transform_indices = @transform_7, window_bounds = array<i64: 1, 8, 32>}]} {
    %c0 = arith.constant 0 : index
    %c0_0 = arith.constant 0 : index
    %c0_1 = arith.constant 0 : index
    %0 = vector.load %arg2[%c0, %c0_0, %c0_1] : memref<1x8x32xbf16, #tpu.memory_space<vmem>>, vector<1x8x32xbf16>
    %1 = vector.shape_cast %0 : vector<1x8x32xbf16> to vector<8x32xbf16>
    %c0_2 = arith.constant 0 : index
    %c0_3 = arith.constant 0 : index
    %2 = vector.load %arg3[%c0_2, %c0_3] : memref<32x32xbf16, #tpu.memory_space<vmem>>, vector<32x32xbf16>
    %cst = arith.constant dense<0.000000e+00> : vector<8x32xf32>
    %3 = tpu.matmul %1, %2, %cst {dimension_numbers = #tpu.dot_dimension_numbers<[1], [0], [0], [1], [0, 0, 1, 1], [], []>} : vector<8x32xbf16>, vector<32x32xbf16>, vector<8x32xf32> -> vector<8x32xf32>
    %c0_4 = arith.constant 0 : index
    %c0_5 = arith.constant 0 : index
    %4 = vector.load %arg4[%c0_4, %c0_5] : memref<1x32xf32, #tpu.memory_space<vmem>>, vector<1x32xf32>
    %5 = vector.broadcast %4 : vector<1x32xf32> to vector<8x32xf32>
    %6 = arith.addf %3, %5 : vector<8x32xf32>
    %c0_6 = arith.constant 0 : index
    %c0_7 = arith.constant 0 : index
    %7 = vector.load %arg5[%c0_6, %c0_7] : memref<32x64xbf16, #tpu.memory_space<vmem>>, vector<32x64xbf16>
    %cst_8 = arith.constant dense<0.000000e+00> : vector<8x64xf32>
    %8 = tpu.matmul %1, %7, %cst_8 {dimension_numbers = #tpu.dot_dimension_numbers<[1], [0], [0], [1], [0, 0, 1, 1], [], []>} : vector<8x32xbf16>, vector<32x64xbf16>, vector<8x64xf32> -> vector<8x64xf32>
    %c0_9 = arith.constant 0 : index
    %c0_10 = arith.constant 0 : index
    %9 = vector.load %arg6[%c0_9, %c0_10] : memref<1x64xf32, #tpu.memory_space<vmem>>, vector<1x64xf32>
    %10 = vector.broadcast %9 : vector<1x64xf32> to vector<8x64xf32>
    %11 = arith.addf %8, %10 : vector<8x64xf32>
    %cst_11 = arith.constant 0.353553385 : f32
    %12 = vector.broadcast %cst_11 : f32 to vector<8x32xf32>
    %13 = arith.mulf %6, %12 : vector<8x32xf32>
    %14 = arith.truncf %13 : vector<8x32xf32> to vector<8x32xbf16>
    %c0_12 = arith.constant 0 : index
    %c0_13 = arith.constant 0 : index
    %c0_14 = arith.constant 0 : index
    %15 = vector.load %arg7[%c0_12, %c0_13, %c0_14] : memref<1x8x32xbf16, #tpu.memory_space<vmem>>, vector<1x8x32xbf16>
    %16 = vector.shape_cast %15 : vector<1x8x32xbf16> to vector<8x32xbf16>
    %17 = vector.shape_cast %14 : vector<8x32xbf16> to vector<1x8x32xbf16>
    tpu.vector_store %arg7[%c0_12, %c0_13, %c0_14], %17 {strides = array<i32>} : memref<1x8x32xbf16, #tpu.memory_space<vmem>>, vector<1x8x32xbf16>,
    %18 = vector.extract_strided_slice %11 {offsets = [0, 0], sizes = [8, 32], strides = [1, 1]} : vector<8x64xf32> to vector<8x32xf32>
    %19 = arith.truncf %18 : vector<8x32xf32> to vector<8x32xbf16>
    %c0_15 = arith.constant 0 : index
    %c0_16 = arith.constant 0 : index
    %c0_17 = arith.constant 0 : index
    %20 = vector.load %arg8[%c0_15, %c0_16, %c0_17] : memref<1x8x32xbf16, #tpu.memory_space<vmem>>, vector<1x8x32xbf16>
    %21 = vector.shape_cast %20 : vector<1x8x32xbf16> to vector<8x32xbf16>
    %22 = vector.shape_cast %19 : vector<8x32xbf16> to vector<1x8x32xbf16>
    tpu.vector_store %arg8[%c0_15, %c0_16, %c0_17], %22 {strides = array<i32>} : memref<1x8x32xbf16, #tpu.memory_space<vmem>>, vector<1x8x32xbf16>,
    %23 = vector.extract_strided_slice %11 {offsets = [0, 32], sizes = [8, 32], strides = [1, 1]} : vector<8x64xf32> to vector<8x32xf32>
    %24 = arith.truncf %23 : vector<8x32xf32> to vector<8x32xbf16>
    %c0_18 = arith.constant 0 : index
    %c0_19 = arith.constant 0 : index
    %c0_20 = arith.constant 0 : index
    %25 = vector.load %arg9[%c0_18, %c0_19, %c0_20] : memref<1x8x32xbf16, #tpu.memory_space<vmem>>, vector<1x8x32xbf16>
    %26 = vector.shape_cast %25 : vector<1x8x32xbf16> to vector<8x32xbf16>
    %27 = vector.shape_cast %24 : vector<8x32xbf16> to vector<1x8x32xbf16>
    tpu.vector_store %arg9[%c0_18, %c0_19, %c0_20], %27 {strides = array<i32>} : memref<1x8x32xbf16, #tpu.memory_space<vmem>>, vector<1x8x32xbf16>,
    return
  }
  func.func @transform_0(%arg0: i32, %arg1: i32) -> (i32, i32, i32) {
    %c0_i32 = arith.constant 0 : i32
    %c0_i32_0 = arith.constant 0 : i32
    return %arg0, %arg1, %c0_i32 : i32, i32, i32
  }
  func.func @transform_1(%arg0: i32, %arg1: i32) -> (i32, i32) {
    %c0_i32 = arith.constant 0 : i32
    %c0_i32_0 = arith.constant 0 : i32
    %c0_i32_1 = arith.constant 0 : i32
    return %c0_i32, %c0_i32_0 : i32, i32
  }
  func.func @transform_2(%arg0: i32, %arg1: i32) -> (i32, i32) {
    %c0_i32 = arith.constant 0 : i32
    %c0_i32_0 = arith.constant 0 : i32
    %c0_i32_1 = arith.constant 0 : i32
    return %c0_i32, %c0_i32_0 : i32, i32
  }
  func.func @transform_3(%arg0: i32, %arg1: i32) -> (i32, i32) {
    %c0_i32 = arith.constant 0 : i32
    %c0_i32_0 = arith.constant 0 : i32
    %c0_i32_1 = arith.constant 0 : i32
    return %c0_i32, %c0_i32_0 : i32, i32
  }
  func.func @transform_4(%arg0: i32, %arg1: i32) -> (i32, i32) {
    %c0_i32 = arith.constant 0 : i32
    %c0_i32_0 = arith.constant 0 : i32
    %c0_i32_1 = arith.constant 0 : i32
    return %c0_i32, %c0_i32_0 : i32, i32
  }
  func.func @transform_5(%arg0: i32, %arg1: i32) -> (i32, i32, i32) {
    %c0_i32 = arith.constant 0 : i32
    %c0_i32_0 = arith.constant 0 : i32
    return %arg0, %arg1, %c0_i32 : i32, i32, i32
  }
  func.func @transform_6(%arg0: i32, %arg1: i32) -> (i32, i32, i32) {
    %c0_i32 = arith.constant 0 : i32
    %c0_i32_0 = arith.constant 0 : i32
    return %arg0, %arg1, %c0_i32 : i32, i32, i32
  }
  func.func @transform_7(%arg0: i32, %arg1: i32) -> (i32, i32, i32) {
    %c0_i32 = arith.constant 0 : i32
    %c0_i32_0 = arith.constant 0 : i32
    return %arg0, %arg1, %c0_i32 : i32, i32, i32
  }
}

</mosaic_0001>

<bundles_post_ra>
// kernel: tpu_custom_call.1
= control target key start
LH: loop header
LB: loop body
LE: loop exit
PB: predicated region body
PF: predicated region fallthrough
CT: control target
= control target key end

     0   :  { %13 = vsyncpa [#allocation3], 0  ;;  %s1502_s0 = inlined_call_operand.hbm [shape: bf16[2,8,32], index: 0, kind: input, shape index: {}]   ;;  %s1503_s1 = inlined_call_operand.hbm [shape: bf16[32,32], index: 1, kind: input, shape index: {}]   ;;  %s1504_s2 = inlined_call_operand.vmem [shape: f32[1,32], index: 2, kind: input, shape index: {}]   ;;  %s1505_s3 = inlined_call_operand.hbm [shape: bf16[32,64], index: 3, kind: input, shape index: {}]   ;;  %s1506_s4 = inlined_call_operand.vmem [shape: f32[1,64], index: 4, kind: input, shape index: {}]   ;;  %s1507_s5 = inlined_call_operand.hbm [shape: bf16[2,8,32], index: 5, kind: output, shape index: {0}]   ;;  %s1508_s6 = inlined_call_operand.hbm [shape: bf16[2,8,32], index: 6, kind: output, shape index: {1}]   ;;  %s1509_s7 = inlined_call_operand.hbm [shape: bf16[2,8,32], index: 7, kind: output, shape index: {2}]  }
   0x1   :  { %15 = vsyncpa [#allocation3 + $0x1], 0 }
   0x2   :  { %16 = vsyncpa [#allocation6], 0 }
   0x3   :  { %17 = vsyncpa [#allocation4], 0 }
   0x4   :  { %19 = vsyncpa [#allocation4 + $0x1], 0 }
   0x5   :  { %20 = vsyncpa [#allocation10], 0 }
   0x6   :  { %22 = vsyncpa [#allocation10 + $0x1], 0  ;;  %s1164_s24 = smov 0   ;;  %s1166_s25 = smov 0  }
   0x7   :  { %s1168_s26 = smov 0   ;;  %s1170_s27 = smov 0  }
   0x8   :  { %s1172_s28 = smov 0   ;;  %s1174_s29 = smov 0  }
   0x9 LB: > { %s1195_s30 = sadd.s32 4294967295, %s1111_s29   ;;  %s1511_s8 = sadd.s32 4294967294, %s1111_s29   ;;  %s1111_s29 = sphi %s1174_s29, %s28_s29   ;;  %s1107_s28 = sphi %s1172_s28, %s1537_s28   ;;  %s1103_s27 = sphi %s1170_s27, %s1536_s27   ;;  %s1099_s26 = sphi %s1168_s26, %s1535_s26   ;;  %s1095_s25 = sphi %s1166_s25, %s1534_s25   ;;  %s1091_s24 = sphi %s1164_s24, %s1533_s24  }
   0xa   : > { %p62_p0 = scmp.ne.s32.totalorder %s1095_s25, %s1091_s24  ;;  %p1510_p1 = scmp.eq.s32.totalorder %s1195_s30, 0 }
   0xb   : > { %p178_p3 = scmp.eq.s32.totalorder %s1511_s8, 1  ;;  %p724_p5 = scmp.ge.s32.totalorder %s1111_s29, 1 }
   0xc   : > { %p1206_p4 = por %p1510_p1, %p62_p0  ;;  %p241_p7 = scmp.lt.s32.totalorder %s1111_s29, 3 }
   0xd   : > { %p1211_p6 = por %p178_p3, %p62_p0  ;;  %s1113_s12 = smov [#allocation5]  }
   0xe   : > { %s1516_s9 = scalar_select %p1206_p4, 1, 0 }
   0xf   : > { %s1517_s10 = scalar_select %p1211_p6, 1, 0 }
  0x10   : > { %p1216_p8 = pnand %p724_p5, %p241_p7  ;;  %s253_s13 = sshll.u32 %s1113_s12, 4  ;;  %s1220_s13 = int_to_ptr.vmem [resolvable:$true] %s253_s13 }
  0x11   : > { %1518 = sst [smem:[#allocation16_spill]] %s1517_s10  ;;  %s1114_s15 = smov [#allocation7]  }
  0x12   : > { %p793_p9 = pneg %p1216_p8  ;;  %s269_s16 = sshll.u32 %s1114_s15, 4  ;;  %s1231_s16 = int_to_ptr.vmem [resolvable:$true] %s269_s16 }
  0x13   : > { %s879_s19 = scalar_lea.hbm %s1503_s1, 256 }
  0x14   : > { %p1227_p11 = pnand %p793_p9, %p1510_p1  ;;  %p880_p12 = scmp.ne.s32.totalorder %s1503_s1, %s879_s19 }
  0x15   : > { %p886_p5 = scmp.lt.u32.totalorder %s879_s19, %s1503_s1 }
  0x16   : > { %p881_p13 = pneg %p1227_p11 }
  0x18   : > { %p882_p0 = pnand %p881_p13, %p880_p12 }
  0x1a   : > { %p883_p3 = pneg %p882_p0 }
  0x1c   : > { %p888_p7 = pnand %p886_p5, %p883_p3 }
  0x1e   : > { %891 = shalt.err (!%p888_p7)
}
  0x1f   : > { %s892_s12 = scalar_lea.vmem %s1220_s13, 256  ;;  %p900_p2 = scmp.lt.s32.totalorder %s1220_s13, %s1220_s13 }
  0x20   : > { %p893_p9 = scmp.ne.s32.totalorder %s1220_s13, %s892_s12  ;;  %p901_p12 = scmp.lt.s32.totalorder %s892_s12, %s892_s12 }
  0x22   : > { %p895_p10 = pnand %p893_p9, %p881_p13  ;;  %p902_p0 = por %p901_p12, %p900_p2 }
  0x24   : > { %p896_p1 = pneg %p895_p10 }
  0x26   : > { %p903_p6 = pnand %p902_p0, %p896_p1 }
  0x28   : > { %906 = shalt.err (!%p903_p6)
}
  0x29   : > { %s1115_s15 = smov 64   ;;  %s1116_s17 = smov 4  }
  0x2a   : > { %796 = dma.hbm_to_vmem [thread:$0]  (!%p1227_p11), %s1503_s1, 256, %s1220_s13, [#allocation6], %s1115_s15, %s1115_s15, %s1116_s17  }
  0x2b   : > { %s907_s22 = scalar_lea.hbm %s1505_s3, 256 }
  0x2c   : > { %p908_p2 = scmp.ne.s32.totalorder %s1505_s3, %s907_s22  ;;  %p914_p10 = scmp.lt.u32.totalorder %s907_s22, %s1505_s3 }
  0x2e   : > { %p910_p1 = pnand %p908_p2, %p881_p13 }
  0x30   : > { %p911_p6 = pneg %p910_p1 }
  0x32   : > { %p916_p3 = pnand %p914_p10, %p911_p6 }
  0x34   : > { %919 = shalt.err (!%p916_p3)
}
  0x35   : > { %s920_s13 = scalar_lea.vmem %s1231_s16, 256  ;;  %p928_p12 = scmp.lt.s32.totalorder %s1231_s16, %s1231_s16 }
  0x36   : > { %p921_p5 = scmp.ne.s32.totalorder %s1231_s16, %s920_s13  ;;  %p929_p0 = scmp.lt.s32.totalorder %s920_s13, %s920_s13 }
  0x38   : > { %p923_p7 = pnand %p921_p5, %p881_p13  ;;  %p930_p2 = por %p929_p0, %p928_p12 }
  0x3a   : > { %p924_p9 = pneg %p923_p7 }
  0x3c   : > { %p931_p1 = pnand %p930_p2, %p924_p9 }
  0x3e   : > { %934 = shalt.err (!%p931_p1)
}
  0x3f   : > { %799 = dma.hbm_to_vmem [thread:$0]  (!%p1227_p11), %s1505_s3, 256, %s1231_s16, [#allocation6], %s1115_s15, %s1115_s15, %s1116_s17  }
  0x40   : > { %s40_s18 = sadd.s32 1, %s1107_s28  ;;  %s49_s19 = sadd.s32 1, %s1099_s26 }
  0x41   : > { %p42_p13 = scmp.ge.s32.totalorder %s40_s18, 2  ;;  %p56_p6 = scmp.ne.s32.totalorder %s1099_s26, %s1095_s25 }
  0x42   : > { %p57_p10 = scmp.eq.s32.totalorder %s1111_s29, 0  ;;  %p816_p3 = scmp.lt.s32.totalorder %s1111_s29, 2 }
  0x43   : > { %s1539_s18 = smov (%p42_p13, %s40_s18), 0  ;;  %p1521_p7 = scmp.eq.s32.totalorder %s1195_s30, 1 }
  0x44   : > { %p58_p5 = por %p57_p10, %p56_p6  ;;  %s44_s20 = ssub.s32 %s1107_s28, %s1539_s18 }
  0x45   : > { %p1295_p9 = por %p1521_p7, %p56_p6  ;;  %s286_s21 = sand.u32 1, %s1099_s26  }
  0x46   : > { %p47_p12 = scmp.eq.s32.totalorder %s44_s20, 0  ;;  %s728_s16 = sshll.u32 %s286_s21, 2 }
  0x47   : > { %s1522_s14 = scalar_select %p1295_p9, 1, 0 }
  0x48   : > { %s729_s15 = sshll.u32 %s1107_s28, 6  ;;  %s290_s13 = scalar_lea.vmem [#allocation2], %s728_s16 }
  0x49   : > { %s1304_s17 = scalar_select %p47_p12, %s1099_s26, %s49_s19  }
  0x4a   : > { %s1309_s12 = scalar_lea.hbm %s1502_s0, %s729_s15  ;;  %s298_s8 = sshll.u32 %s290_s13, 4  ;;  %s1317_s8 = int_to_ptr.vmem [resolvable:$true] %s298_s8 }
  0x4b   : > { %p1313_p11 = pnand %p816_p3, %p58_p5  ;;  %s287_s19 = scalar_lea.sflag [#allocation3], %s286_s21 }
  0x4c   : > { %s935_s20 = scalar_lea.hbm %s1309_s12, 64  ;;  %s940_s22 = scalar_lea.hbm %s1502_s0, 128 }
  0x4d   : > { %p936_p0 = scmp.ne.s32.totalorder %s1309_s12, %s935_s20  ;;  %p937_p2 = pneg %p1313_p11 }
  0x4e   : > { %p941_p6 = scmp.lt.u32.totalorder %s1309_s12, %s1502_s0  ;;  %p942_p10 = scmp.lt.u32.totalorder %s940_s22, %s935_s20 }
  0x4f   : > { %p938_p1 = pnand %p937_p2, %p936_p0  ;;  %p944_p5 = scmp.lt.u32.totalorder %s935_s20, %s1309_s12 }
  0x50   : > { %p943_p3 = por %p942_p10, %p941_p6 }
  0x51   : > { %p939_p13 = pneg %p938_p1 }
  0x52   : > { %p945_p7 = por %p944_p5, %p943_p3 }
  0x54   : > { %p946_p12 = pnand %p945_p7, %p939_p13 }
  0x56   : > { %949 = shalt.err (!%p946_p12)
}
  0x57   : > { %s950_s21 = scalar_lea.vmem %s1317_s8, 64  ;;  %s1117_s16 = smov [#allocation2]  }
  0x58   : > { %p951_p0 = scmp.ne.s32.totalorder %s1317_s8, %s950_s21  ;;  %s955_s15 = sshll.u32 %s1117_s16, 4  ;;  %s956_s15 = int_to_ptr.vmem [resolvable:$false] %s955_s15 }
  0x59   : > { %s957_s23 = scalar_lea.vmem %s956_s15, 128  ;;  %p958_p4 = scmp.lt.s32.totalorder %s1317_s8, %s956_s15 }
  0x5a   : > { %p953_p1 = pnand %p951_p0, %p937_p2  ;;  %p959_p6 = scmp.lt.s32.totalorder %s957_s23, %s950_s21 }
  0x5c   : > { %p954_p9 = pneg %p953_p1  ;;  %p960_p10 = por %p959_p6, %p958_p4 }
  0x5e   : > { %p961_p3 = pnand %p960_p10, %p954_p9 }
  0x60   : > { %964 = shalt.err (!%p961_p3)
}
  0x61   : > { %803 = dma.hbm_to_vmem [thread:$0]  (!%p1313_p11), %s1309_s12, 64, %s1317_s8, %s287_s19  }
  0x62   : > { %307 = sbr.rel (%p1216_p8) target bundleno = 464 (0x1d0), region = 40  ;;  %s1347_s20 = sand.u32 (!%p1216_p8), 1, %s1095_s25  }
  0x63   : > { %s1350_s22 = sshll.u32 (!%p1216_p8), %s1347_s20, 2  ;;  %s310_s13 = scalar_lea.sflag (!%p1216_p8), [#allocation3], %s1347_s20 }
  0x64   : > { %s313_s21 = scalar_lea.vmem (!%p1216_p8), [#allocation2], %s1350_s22  ;;  %p1524_p4 = scmp.ne.s32.totalorder (!%p1216_p8), %s1516_s9, 0 }
  0x69   : > { %1074 = dma.done.wait (%p1524_p4), %s310_s13, 64  }
  0x6a   : > { %1076 = vsyncadd (%p1524_p4), %s310_s13, 4294967232  ;;  %p1525_p9 = scmp.eq.s32.totalorder %s1195_s30, 0 }
  0x6c   : > { %1078 = dma.done.wait (%p1525_p9), [#allocation6], 512   ;;  %p1526_p8 = pmov %p1525_p9 }
  0x6d   : > { %v1118_v0 = vmov 0.0   ;;  %vm1119_vm0 = vmmov 0   ;;  %v875_v1 = vld [vmem:[#allocation7] sm:$0xff]   ;;  %v876_v2 = vld [vmem:[#allocation7 + $0x8] sm:$0xff]   ;;  %v877_v3 = vld [vmem:[#allocation5] sm:$0xff]   ;;  %vm387_vm1 = vcmask 261120  }
  0x6e   : > { %1080 = vsyncadd (%p1526_p8), [#allocation6], 4294966784  ;;  %769 = vmatprep.subr.bf16.mxu1 %v1118_v0  ;;  %773 = vmatprep.mubr.msk.bf16.mxu1 %vm1119_vm0, %v1118_v0  ;;  %v878_v4 = vld [vmem:[#allocation5 + $0x8] sm:$0xff]   ;;  %v363_v5 = vld [vmem:[%s313_s21] sm:$0xf]  ;;  %s512_s12 = sand.u32 1, %s1195_s30  }
  0x6f   : > { %761 = vmatprep.subr.bf16.mxu0 %v1118_v0  ;;  %765 = vmatprep.mubr.msk.bf16.mxu0 %vm1119_vm0, %v1118_v0  ;;  %v741_v6 = vld [vmem:[%s1506_s4] ss:$0 sm:$0xff]  ;;  %s1367_s8 = sshll.u32 %s1103_s27, 6  ;;  %s354_s10 = scalar_lea.vmem [#allocation9], %s1350_s22  ;;  %vm496_vm2 = vcmask 257024  }
  0x70   : > { %770 = vmatpush3.bf16.msra.mxu1 %v875_v1  ;;  %762 = vmatpush3.bf16.msra.mxu0 %v877_v3  ;;  %s546_s19 = sshll.u32 %s354_s10, 4  ;;  %v737_v10 = vld [vmem:[%s1504_s2] ss:$0 sm:$0xff]  ;;  %s1377_s27 = scalar_lea.hbm %s1508_s6, %s1367_s8  ;;  %s1379_s19 = int_to_ptr.vmem [resolvable:$true] %s546_s19 }
  0x71   : > { %771 = vmatprep.subr.bf16.mxu1 %v1118_v0  ;;  %763 = vmatprep.subr.bf16.mxu0 %v1118_v0  ;;  %s1120_s13 = smov 96   ;;  %s1515_s21 = scalar_lea.vmem [#allocation8], %s1350_s22 }
  0x72   : > { %s1385_s9 = sshll.u32 %s1515_s21, 4  ;;  %s1387_s11 = scalar_lea.sflag [#allocation10], %s512_s12  ;;  %s1418_s9 = int_to_ptr.vmem [resolvable:$true] %s1385_s9 }
  0x73   : > { %s965_s16 = scalar_lea.vmem %s1379_s19, 64  ;;  %p1527_p2 = scmp.ne.s32.totalorder %s1522_s14, 0 }
  0x74   : > { %772 = vmatpush3.bf16.msra.mxu1 %v876_v2  ;;  %764 = vmatpush3.bf16.msra.mxu0 %v878_v4  ;;  %p966_p11 = scmp.ne.s32.totalorder %s1379_s19, %s965_s16  ;;  %s1121_s15 = smov [#allocation9]  }
  0x75   : > { %s969_s30 = sshll.u32 %s1121_s15, 4  ;;  %s970_s30 = int_to_ptr.vmem [resolvable:$false] %s969_s30 }
  0x76   : > { %p967_p13 = pnand %p966_p11, %p1527_p2  ;;  %s971_s23 = scalar_lea.vmem %s970_s30, 128 }
  0x77   : > { %774 = vmatmul.mubr.msk.bf16.vlgmr.msra.gmra.mrb[0].mxu1 %vm387_vm1, %v363_v5  ;;  %766 = vmatmul.mubr.msk.bf16.vlgmr.msra.gmra.mrb[0].mxu0 %vm387_vm1, %v363_v5  ;;  %p972_p7 = scmp.lt.s32.totalorder %s1379_s19, %s970_s30  ;;  %p973_p12 = scmp.lt.s32.totalorder %s971_s23, %s965_s16 }
  0x78   : > { %p968_p5 = pneg %p967_p13 }
  0x79   : > { %p974_p0 = por %p973_p12, %p972_p7 }
  0x7b   : > { %p975_p1 = pnand %p974_p0, %p968_p5 }
 0x14a   : > { %v488_v7 = vpop.f32.mrb[0].mxu1  ;;  %v425_v14 = vpop.f32.mrb[0].mxu0 }
 0x14b   : > { %v489_v8 = vadd.f32 %v741_v6, %v488_v7  ;;  %v775_v9 = vpop.f32.mrb[1].mxu1  ;;  %v426_v15 = vadd.f32 %v737_v10, %v425_v14  ;;  %v767_v16 = vpop.f32.mrb[1].mxu0 }
 0x14c   : > { %v491_v11 = vpop.f32.mrb[2].mxu1  ;;  %v428_v17 = vpop.f32.mrb[2].mxu0 }
 0x14d   : > { %v498_v12 = vpack.c.bf16 %v489_v8, %v489_v8  ;;  %v776_v13 = vpop.f32.mrb[3].mxu1  ;;  %v494_v18 = vmul.f32 0.35355338, %v426_v15  ;;  %v768_v19 = vpop.f32.mrb[3].mxu0 }
 0x14f   : > { %503 = vrot.lane.b32.xlu0 %v498_v12, %s1120_s13  ;;  %499 = vst.msk [vmem:[%s354_s10] sm:$0xf] %vm496_vm2, %v498_v12 }
 0x150   : > { %978 = shalt.err (!%p975_p1)
}
 0x151   : > { %s979_s12 = scalar_lea.hbm %s1377_s27, 64  ;;  %s983_s15 = scalar_lea.hbm %s1508_s6, 128 }
 0x152   : > { %p980_p6 = scmp.ne.s32.totalorder %s1377_s27, %s979_s12  ;;  %p984_p4 = scmp.lt.u32.totalorder %s1377_s27, %s1508_s6 }
 0x153   : > { %p985_p9 = scmp.lt.u32.totalorder %s983_s15, %s979_s12  ;;  %p987_p11 = scmp.lt.u32.totalorder %s979_s12, %s1377_s27 }
 0x154   : > { %p981_p10 = pnand %p980_p6, %p1527_p2 }
 0x155   : > { %p986_p8 = por %p985_p9, %p984_p4 }
 0x156   : > { %p982_p3 = pneg %p981_p10 }
 0x157   : > { %p988_p13 = por %p987_p11, %p986_p8 }
 0x159   : > { %p989_p5 = pnand %p988_p13, %p982_p3 }
 0x15b   : > { %992 = shalt.err (!%p989_p5)
}
 0x15c   : > { %788 = dma.vmem_to_hbm [thread:$0]  (%p1527_p2), %s1379_s19, 64, %s1377_s27, %s1387_s11   ;;  %v495_v20 = vpack.c.bf16 %v494_v18, %v494_v18 }
 0x15d   : > { %s1415_s23 = scalar_lea.hbm %s1507_s5, %s1367_s8  ;;  %s1528_s12 = scalar_lea.vmem [#allocation8], %s1350_s22 }
 0x15e   : > { %497 = vst.msk [vmem:[%s1528_s12] sm:$0xf] %vm496_vm2, %v495_v20  ;;  %s508_s10 = scalar_lea.sflag [#allocation4], %s1347_s20  ;;  %s993_s13 = scalar_lea.vmem %s1418_s9, 64 }
 0x15f   : > { %p994_p7 = scmp.ne.s32.totalorder %s1418_s9, %s993_s13  ;;  %s1122_s19 = smov [#allocation8]  }
 0x160   : > { %s997_s27 = sshll.u32 %s1122_s19, 4  ;;  %s998_s27 = int_to_ptr.vmem [resolvable:$false] %s997_s27 }
 0x161   : > { %p995_p12 = pnand %p994_p7, %p1527_p2  ;;  %s999_s15 = scalar_lea.vmem %s998_s27, 128 }
 0x162   : > { %p1000_p1 = scmp.lt.s32.totalorder %s1418_s9, %s998_s27  ;;  %p1001_p6 = scmp.lt.s32.totalorder %s999_s15, %s993_s13 }
 0x163   : > { %p996_p0 = pneg %p995_p12 }
 0x164   : > { %p1002_p10 = por %p1001_p6, %p1000_p1 }
 0x166   : > { %p1003_p3 = pnand %p1002_p10, %p996_p0 }
 0x168   : > { %1006 = shalt.err (!%p1003_p3)
}
 0x169   : > { %s1007_s20 = scalar_lea.hbm %s1415_s23, 64  ;;  %s1011_s16 = scalar_lea.hbm %s1507_s5, 128 }
 0x16a   : > { %p1008_p4 = scmp.ne.s32.totalorder %s1415_s23, %s1007_s20  ;;  %p1012_p11 = scmp.lt.u32.totalorder %s1415_s23, %s1507_s5 }
 0x16b   : > { %p1013_p13 = scmp.lt.u32.totalorder %s1011_s16, %s1007_s20  ;;  %p1015_p7 = scmp.lt.u32.totalorder %s1007_s20, %s1415_s23 }
 0x16c   : > { %p1009_p9 = pnand %p1008_p4, %p1527_p2 }
 0x16d   : > { %p1014_p5 = por %p1013_p13, %p1012_p11 }
 0x16e   : > { %p1010_p8 = pneg %p1009_p9 }
 0x16f   : > { %p1016_p12 = por %p1015_p7, %p1014_p5 }
 0x171   : > { %p1017_p0 = pnand %p1016_p12, %p1010_p8 }
 0x173   : > { %1020 = shalt.err (!%p1017_p0)
}
 0x174   : > { %787 = dma.vmem_to_hbm [thread:$0]  (%p1527_p2), %s1418_s9, 64, %s1415_s23, %s508_s10  }
 0x175   : > { %s361_s13 = scalar_lea.vmem [#allocation11], %s1350_s22  ;;  %s1450_s21 = scalar_lea.hbm %s1509_s7, %s1367_s8 }
 0x176   : > { %s560_s27 = sshll.u32 %s361_s13, 4  ;;  %s1123_s22 = smov [#allocation11]   ;;  %s1452_s27 = int_to_ptr.vmem [resolvable:$true] %s560_s27 }
 0x177   : > { %s1021_s20 = scalar_lea.vmem %s1452_s27, 64  ;;  %s1025_s9 = sshll.u32 %s1123_s22, 4  ;;  %s1026_s9 = int_to_ptr.vmem [resolvable:$false] %s1025_s9 }
 0x178   : > { %p1022_p1 = scmp.ne.s32.totalorder %s1452_s27, %s1021_s20  ;;  %s1027_s23 = scalar_lea.vmem %s1026_s9, 128 }
 0x179   : > { %p1028_p3 = scmp.lt.s32.totalorder %s1452_s27, %s1026_s9  ;;  %p1029_p4 = scmp.lt.s32.totalorder %s1027_s23, %s1021_s20 }
 0x17a   : > { %p1023_p6 = pnand %p1022_p1, %p1527_p2 }
 0x17b   : > { %p1030_p9 = por %p1029_p4, %p1028_p3 }
 0x17c   : > { %p1024_p10 = pneg %p1023_p6 }
 0x17e   : > { %p1031_p8 = pnand %p1030_p9, %p1024_p10 }
 0x1c1   : > { %v504_v21 = vpop.permute.xlu0 %503 }
 0x1c2   : > { %506 = vst.msk [vmem:[%s361_s13] sm:$0xf] %vm496_vm2, %v504_v21 }
 0x1c3   : > { %1034 = shalt.err (!%p1031_p8)
}
 0x1c4   : > { %s1035_s8 = scalar_lea.hbm %s1450_s21, 64  ;;  %s1039_s12 = scalar_lea.hbm %s1509_s7, 128 }
 0x1c5   : > { %p1036_p11 = scmp.ne.s32.totalorder %s1450_s21, %s1035_s8  ;;  %p1040_p7 = scmp.lt.u32.totalorder %s1450_s21, %s1509_s7 }
 0x1c6   : > { %p1041_p12 = scmp.lt.u32.totalorder %s1039_s12, %s1035_s8  ;;  %p1043_p1 = scmp.lt.u32.totalorder %s1035_s8, %s1450_s21 }
 0x1c7   : > { %p1037_p13 = pnand %p1036_p11, %p1527_p2 }
 0x1c8   : > { %p1042_p0 = por %p1041_p12, %p1040_p7 }
 0x1c9   : > { %p1038_p5 = pneg %p1037_p13 }
 0x1ca   : > { %p1044_p6 = por %p1043_p1, %p1042_p0 }
 0x1cc   : > { %p1045_p10 = pnand %p1044_p6, %p1038_p5 }
 0x1ce   : > { %1048 = shalt.err (!%p1045_p10)
}
 0x1cf   : > { %789 = dma.vmem_to_hbm [thread:$0]  (%p1527_p2), %s1452_s27, 64, %s1450_s21, %s1387_s11  }
 0x1d0 PF: > { %s1529_s15 = sld [smem:[#allocation16_spill]]  ;;  %s572_s30 = sand.u32 1, %s1091_s24  }
 0x1d1   : > { %p1531_p4 = scmp.ge.s32.totalorder %s1111_s29, 2  ;;  %s573_s20 = scalar_lea.sflag [#allocation4], %s572_s30 }
 0x1d6   : > { %p1530_p3 = scmp.ne.s32.totalorder %s1529_s15, 0 }
 0x1d8   : > { %p805_p9 = pnand %p1531_p4, %p1530_p3 }
 0x1da   : > { %1082 = dma.done.wait (!%p805_p9), %s573_s20, 64  }
 0x1db   : > { %1084 = vsyncadd (!%p805_p9), %s573_s20, 4294967232  ;;  %s1532_s22 = sadd.s32 4294967294, %s1111_s29  }
 0x1dc   : > { %s581_s9 = sand.u32 1, %s1532_s22  }
 0x1dd   : > { %s582_s23 = scalar_lea.sflag [#allocation10], %s581_s9 }
 0x1de   : > { %1086 = dma.done.wait (!%p805_p9), %s582_s23, 128  }
 0x1df   : > { %1088 = vsyncadd (!%p805_p9), %s582_s23, 4294967168  ;;  %s28_s29 = sadd.s32 1, %s1111_s29   ;;  %s1533_s24 = smov %s1095_s25 }
 0x1e0   : > { %p25_p2 = scmp.ge.s32.totalorder %s28_s29, 4   ;;  %s1534_s25 = smov %s1099_s26 }
 0x1e1   : > { %s1535_s26 = smov %s1304_s17  ;;  %s1536_s27 = smov %s1107_s28 }
 0x1e2   : > { %s1537_s28 = smov %s1539_s18  ;;  %27 = sbr.rel (!%p25_p2) target bundleno = 9 (0x9), region = 125 }
 0x1e9   :  { %596 = vsyncpa [#allocation3], 1 }
 0x1ea   :  { %598 = vsyncpa [#allocation3 + $0x1], 1 }
 0x1eb   :  { %599 = vsyncpa [#allocation6], 1 }
 0x1ec   :  { %600 = vsyncpa [#allocation4], 1 }
 0x1ed   :  { %602 = vsyncpa [#allocation4 + $0x1], 1 }
 0x1ee   :  { %603 = vsyncpa [#allocation10], 1 }
 0x1ef   :  { %605 = vsyncpa [#allocation10 + $0x1], 1 }

</bundles_post_ra>
